<compile_context>
chip_gen: v5e
topology: v5e:2x2
jax: 0.10.0
libtpu: 0.0.40
codegen_flags: <defaults>
</compile_context>

<pallas_src>
import functools

import jax
import jax.numpy as jnp
from jax.experimental import pallas as pl
from jax.experimental.pallas import tpu as pltpu


_SQRT_2_OVER_PI = 0.7978845608028654


def _gelu_tanh(h):
    # Matches nn.GELU(approximate='tanh'), computed in f32.
    return 0.5 * h * (1.0 + jnp.tanh(_SQRT_2_OVER_PI * (h + 0.044715 * h * h * h)))


# ----------------------------------------------------------------------------
# Kernels
# ----------------------------------------------------------------------------
def _mlp_kernel_resident(x_ref, wfc_ref, bfc_ref, wproj_ref, bproj_ref, o_ref):
    # x_ref:     (tm, Dp)   token tile
    # wfc_ref:   (Dp, Hp)   full c_fc weight, VMEM-resident (constant index_map)
    # bfc_ref:   (1, Hp)    full c_fc bias (f32)
    # wproj_ref: (Hp, Dp)   full c_proj weight, VMEM-resident
    # bproj_ref: (1, Dp)    c_proj bias (f32)
    # o_ref:     (tm, Dp)   output tile
    h = jnp.dot(x_ref[...], wfc_ref[...], preferred_element_type=jnp.float32)
    h = _gelu_tanh(h + bfc_ref[...])
    out = jnp.dot(h.astype(wproj_ref.dtype), wproj_ref[...],
                  preferred_element_type=jnp.float32)
    o_ref[...] = (out + bproj_ref[...]).astype(o_ref.dtype)


def _mlp_kernel_stream(x_ref, wfc_ref, bfc_ref, wproj_ref, bproj_ref, o_ref,
                       acc_ref, *, th):
    # x_ref:     (tm, Dp)   token tile (same block across the h axis -> no re-DMA)
    # wfc_ref:   (Dp, th)   c_fc weight column tile
    # bfc_ref:   (1, Hp)    full c_fc bias, resident; sliced in-kernel
    # wproj_ref: (th, Dp)   c_proj weight row tile
    # bproj_ref: (1, Dp)    c_proj bias
    # o_ref:     (tm, Dp)   output tile
    # acc_ref:   (tm, Dp)   f32 accumulator carried across the hidden (h) axis
    h_idx = pl.program_id(1)

    @pl.when(h_idx == 0)
    def _():
        acc_ref[...] = jnp.zeros_like(acc_ref)

    start = pl.multiple_of(h_idx * th, th)
    bfc = bfc_ref[:, pl.ds(start, th)]                      # (1, th) f32 slice

    h = jnp.dot(x_ref[...], wfc_ref[...], preferred_element_type=jnp.float32)
    h = _gelu_tanh(h + bfc)
    acc_ref[...] += jnp.dot(h.astype(wproj_ref.dtype), wproj_ref[...],
                            preferred_element_type=jnp.float32)

    @pl.when(h_idx == pl.num_programs(1) - 1)
    def _():
        o_ref[...] = (acc_ref[...] + bproj_ref[...]).astype(o_ref.dtype)


# ----------------------------------------------------------------------------
# Sizing helpers
# ----------------------------------------------------------------------------
def _round_up(x, m):
    return (x + m - 1) // m * m


def _cdiv(a, b):
    return (a + b - 1) // b


def _vmem_budget_bytes():
    """Generation-aware usable-VMEM budget (~100 MiB on 128 MiB parts, ~52 MiB on 64 MiB)."""
    cap = None
    try:
        info = pltpu.get_tpu_info()
        cap = getattr(info, "vmem_capacity_bytes", None)
    except Exception:
        cap = None
    if not cap:
        cap = 64 * 1024 * 1024  # conservative default (v7x per-TC VMEM)
    return int(min(cap - 12 * 1024 * 1024, 100 * 1024 * 1024))


def _vmem_estimate(tm, Dp, Hp, th, n_h_steps, cbytes):
    """Conservative VMEM requirement (double-buffered pipeline inputs/outputs + temps)."""
    buf = 2
    x_b = buf * tm * Dp * cbytes
    o_b = buf * tm * Dp * cbytes
    wfc_b = buf * Dp * th * cbytes
    wpj_b = buf * th * Dp * cbytes
    bias_b = buf * (Hp + Dp) * 4
    acc_b = tm * Dp * 4 if n_h_steps > 1 else 0
    tmp_b = tm * th * (8 + cbytes)     # f32 hidden + GELU temps + narrow cast copy
    return x_b + o_b + wfc_b + wpj_b + bias_b + acc_b + tmp_b


# ----------------------------------------------------------------------------
# Wrapper
# ----------------------------------------------------------------------------
def mlp_pallas(x, w_fc, b_fc, w_proj, b_proj, *, tm=512, th=None,
               compute_dtype=jnp.bfloat16, out_dtype=None):
    """Fused GPT-2 MLP forward.

    x: (M, D).  w_fc: (D, H), b_fc: (H,), w_proj: (H, D), b_proj: (D,).
    Weights are passed pre-transposed as [in, out] so the kernel runs plain x @ W on the MXU.
    compute_dtype: operand dtype fed to the MXU (default bf16; accumulation stays f32).
    th: None -> auto (full-H resident weights when they fit in VMEM); an int < H forces
        streaming the hidden dim with that tile size.
    """
    M, D = x.shape
    H = w_fc.shape[1]
    orig_dtype = x.dtype
    out_dtype = out_dtype if out_dtype is not None else orig_dtype

    cdt = jnp.dtype(compute_dtype) if compute_dtype is not None else jnp.dtype(orig_dtype)
    cbytes = cdt.itemsize

    budget = _vmem_budget_bytes()

    # --- padded embedding dim (lane-dense loads/stores) ---------------------
    Dp = _round_up(D, 128)

    # --- token tile: multiple of 8; keep >= 2 M steps for megacore/2-TC -----
    Mp8 = _round_up(max(M, 1), 8)
    tm_eff = max(8, min(_round_up(tm, 8), Mp8))
    if Mp8 >= 16 and _cdiv(Mp8, tm_eff) < 2:
        tm_eff = _round_up(_cdiv(Mp8, 2), 8)

    # --- hidden tile: prefer resident full weights when they fit in VMEM ----
    Hp128 = _round_up(H, 128)
    resident = (th is None or th >= H) and \
        _vmem_estimate(tm_eff, Dp, Hp128, Hp128, 1, cbytes) <= budget
    if resident:
        th_eff = Hp128
    else:
        th_req = th if th is not None else 1024
        th_eff = max(128, min(_round_up(th_req, 128), Hp128))
        while th_eff > 128 and _vmem_estimate(tm_eff, Dp, Hp128, th_eff, 2, cbytes) > budget:
            th_eff = max(128, (th_eff // 2) // 128 * 128)
        while tm_eff > 8 and _vmem_estimate(tm_eff, Dp, Hp128, th_eff, 2, cbytes) > budget:
            tm_eff = max(8, _round_up(tm_eff // 2, 8))

    Mp = _round_up(M, tm_eff)
    Hp = _round_up(H, th_eff)
    n_h_steps = Hp // th_eff

    # --- cast + zero-pad (padded rows/cols contribute nothing; sliced off) --
    xc = x.astype(cdt)
    wfc = w_fc.astype(cdt)
    wpj = w_proj.astype(cdt)
    bfc = b_fc.astype(jnp.float32)
    bpj = b_proj.astype(jnp.float32)

    if Mp != M or Dp != D:
        xc = jnp.pad(xc, ((0, Mp - M), (0, Dp - D)))
    if Dp != D or Hp != H:
        wfc = jnp.pad(wfc, ((0, Dp - D), (0, Hp - H)))
        wpj = jnp.pad(wpj, ((0, Hp - H), (0, Dp - D)))
    if Hp != H:
        bfc = jnp.pad(bfc, ((0, Hp - H),))
    if Dp != D:
        bpj = jnp.pad(bpj, ((0, Dp - D),))

    bfc2 = bfc.reshape(1, Hp)
    bpj2 = bpj.reshape(1, Dp)

    est = _vmem_estimate(tm_eff, Dp, Hp, th_eff, n_h_steps, cbytes)
    vmem_limit = int(min(budget, max(est + est // 2, 32 * 1024 * 1024)))

    if resident:
        grid = (Mp // tm_eff,)
        in_specs = [
            pl.BlockSpec((tm_eff, Dp), lambda i: (i, 0)),   # x tile
            pl.BlockSpec((Dp, Hp), lambda i: (0, 0)),       # W_fc (resident)
            pl.BlockSpec((1, Hp), lambda i: (0, 0)),        # b_fc (resident)
            pl.BlockSpec((Hp, Dp), lambda i: (0, 0)),       # W_proj (resident)
            pl.BlockSpec((1, Dp), lambda i: (0, 0)),        # b_proj (resident)
        ]
        out_specs = pl.BlockSpec((tm_eff, Dp), lambda i: (i, 0))
        scratch_shapes = []
        kernel = _mlp_kernel_resident
        dims = ("parallel",)
    else:
        grid = (Mp // tm_eff, n_h_steps)
        in_specs = [
            pl.BlockSpec((tm_eff, Dp), lambda i, h: (i, 0)),    # x tile (reused across h)
            pl.BlockSpec((Dp, th_eff), lambda i, h: (0, h)),    # W_fc column tile
            pl.BlockSpec((1, Hp), lambda i, h: (0, 0)),         # b_fc resident, sliced in-kernel
            pl.BlockSpec((th_eff, Dp), lambda i, h: (h, 0)),    # W_proj row tile
            pl.BlockSpec((1, Dp), lambda i, h: (0, 0)),         # b_proj
        ]
        out_specs = pl.BlockSpec((tm_eff, Dp), lambda i, h: (i, 0))
        scratch_shapes = [pltpu.VMEM((tm_eff, Dp), jnp.float32)]
        kernel = functools.partial(_mlp_kernel_stream, th=th_eff)
        dims = ("parallel", "arbitrary")

    out = pl.pallas_call(
        kernel,
        out_shape=jax.ShapeDtypeStruct((Mp, Dp), out_dtype),
        grid_spec=pltpu.PrefetchScalarGridSpec(
            num_scalar_prefetch=0,
            grid=grid,
            in_specs=in_specs,
            out_specs=out_specs,
            scratch_shapes=scratch_shapes,
        ),
        compiler_params=pltpu.CompilerParams(
            dimension_semantics=dims,
            vmem_limit_bytes=vmem_limit,
        ),
    )(xc, wfc, bfc2, wpj, bpj2)

    if Mp != M or Dp != D:
        out = out[:M, :D]
    return out


def mlp_reference(x, w_fc, b_fc, w_proj, b_proj):
    h = x @ w_fc + b_fc
    h = 0.5 * h * (1.0 + jnp.tanh(_SQRT_2_OVER_PI * (h + 0.044715 * h ** 3)))
    return h @ w_proj + b_proj


if __name__ == "__main__":
    # Small GPT-2-like config: batch=2, seq=24, n_embd=128 (hidden = 512).
    # Exercises M-padding, >=2-step parallel M axis, the resident-weight path,
    # the streamed-H accumulator path, and the default bf16 operand path.
    batch, seq, n_embd = 2, 24, 128
    hidden = 4 * n_embd

    key = jax.random.PRNGKey(0)
    kx, k1, k2, k3, k4 = jax.random.split(key, 5)

    x = jax.random.normal(kx, (batch, seq, n_embd), dtype=jnp.float32)
    w_fc = (jax.random.normal(k1, (n_embd, hidden), dtype=jnp.float32)
            * (1.0 / jnp.sqrt(n_embd)))
    b_fc = jax.random.normal(k2, (hidden,), dtype=jnp.float32) * 0.02
    w_proj = (jax.random.normal(k3, (hidden, n_embd), dtype=jnp.float32)
              * (1.0 / jnp.sqrt(hidden)))
    b_proj = jax.random.normal(k4, (n_embd,), dtype=jnp.float32) * 0.02

    # Flatten tokens: (B, T, D) -> (B*T, D); M = 48 (not a multiple of the tile).
    x2d = x.reshape(batch * seq, n_embd)
    ref2d = mlp_reference(x2d, w_fc, b_fc, w_proj, b_proj)

    # 1) f32 operands, resident-weight path (auto tile selection).
    out_res = mlp_pallas(x2d, w_fc, b_fc, w_proj, b_proj,
                         compute_dtype=jnp.float32)
    jax.block_until_ready(out_res)
    assert out_res.shape == ref2d.shape
    assert jnp.allclose(out_res, ref2d, atol=2e-4, rtol=2e-4), "f32 resident mismatch"

    # 2) f32 operands, streamed hidden axis (forced with th < H) + small token tile.
    out_str = mlp_pallas(x2d, w_fc, b_fc, w_proj, b_proj,
                         tm=32, th=256, compute_dtype=jnp.float32)
    jax.block_until_ready(out_str)
    assert jnp.allclose(out_str, ref2d, atol=2e-4, rtol=2e-4), "f32 streaming mismatch"

    # 3) Default bf16-operand / f32-accumulation path (recommended on v5e/v6e/v7x).
    out_bf16 = mlp_pallas(x2d, w_fc, b_fc, w_proj, b_proj)
    jax.block_until_ready(out_bf16)
    max_err = jnp.max(jnp.abs(out_bf16.astype(jnp.float32) - ref2d))
    assert max_err < 0.1, f"bf16 mismatch vs reference (max err {max_err})"

    print("KERNEL_OK")
</pallas_src>

<mosaic_0001>
module attributes {stable_mosaic.version = 11 : i64} {
  func.func @_mlp_kernel_resident(%arg0: i32, %arg1: memref<24x128xf32, #tpu.memory_space<vmem>>, %arg2: memref<128x512xf32, #tpu.memory_space<vmem>>, %arg3: memref<1x512xf32, #tpu.memory_space<vmem>>, %arg4: memref<512x128xf32, #tpu.memory_space<vmem>>, %arg5: memref<1x128xf32, #tpu.memory_space<vmem>>, %arg6: memref<24x128xf32, #tpu.memory_space<vmem>>) attributes {dimension_semantics = [#tpu.dimension_semantics<parallel>], iteration_bounds = array<i64: 2>, scalar_prefetch = 0 : i64, scratch_operands = 0 : i64, tpu.core_type = #tpu.core_type<tc>, window_params = [{transform_indices = @transform_0, window_bounds = array<i64: 24, 128>}, {pipeline_mode = #tpu.pipeline_mode<synchronous>, transform_indices = @transform_1, window_bounds = array<i64: 128, 512>}, {pipeline_mode = #tpu.pipeline_mode<synchronous>, transform_indices = @transform_2, window_bounds = array<i64: 1, 512>}, {pipeline_mode = #tpu.pipeline_mode<synchronous>, transform_indices = @transform_3, window_bounds = array<i64: 512, 128>}, {pipeline_mode = #tpu.pipeline_mode<synchronous>, transform_indices = @transform_4, window_bounds = array<i64: 1, 128>}, {transform_indices = @transform_5, window_bounds = array<i64: 24, 128>}]} {
    %c0 = arith.constant 0 : index
    %c0_0 = arith.constant 0 : index
    %0 = vector.load %arg1[%c0, %c0_0] : memref<24x128xf32, #tpu.memory_space<vmem>>, vector<24x128xf32>
    %c0_1 = arith.constant 0 : index
    %c0_2 = arith.constant 0 : index
    %1 = vector.load %arg2[%c0_1, %c0_2] : memref<128x512xf32, #tpu.memory_space<vmem>>, vector<128x512xf32>
    %cst = arith.constant dense<0.000000e+00> : vector<24x512xf32>
    %2 = tpu.matmul %0, %1, %cst {dimension_numbers = #tpu.dot_dimension_numbers<[1], [0], [0], [1], [0, 0, 1, 1], [], []>} : vector<24x128xf32>, vector<128x512xf32>, vector<24x512xf32> -> vector<24x512xf32>
    %c0_3 = arith.constant 0 : index
    %c0_4 = arith.constant 0 : index
    %3 = vector.load %arg3[%c0_3, %c0_4] : memref<1x512xf32, #tpu.memory_space<vmem>>, vector<1x512xf32>
    %4 = vector.broadcast %3 : vector<1x512xf32> to vector<24x512xf32>
    %5 = arith.addf %2, %4 : vector<24x512xf32>
    %cst_5 = arith.constant 5.000000e-01 : f32
    %6 = vector.broadcast %cst_5 : f32 to vector<24x512xf32>
    %7 = arith.mulf %6, %5 : vector<24x512xf32>
    %cst_6 = arith.constant 4.471500e-02 : f32
    %8 = vector.broadcast %cst_6 : f32 to vector<24x512xf32>
    %9 = arith.mulf %8, %5 : vector<24x512xf32>
    %10 = arith.mulf %9, %5 : vector<24x512xf32>
    %11 = arith.mulf %10, %5 : vector<24x512xf32>
    %12 = arith.addf %5, %11 : vector<24x512xf32>
    %cst_7 = arith.constant 0.797884583 : f32
    %13 = vector.broadcast %cst_7 : f32 to vector<24x512xf32>
    %14 = arith.mulf %13, %12 : vector<24x512xf32>
    %15 = math.tanh %14 : vector<24x512xf32>
    %cst_8 = arith.constant 1.000000e+00 : f32
    %16 = vector.broadcast %cst_8 : f32 to vector<24x512xf32>
    %17 = arith.addf %16, %15 : vector<24x512xf32>
    %18 = arith.mulf %7, %17 : vector<24x512xf32>
    %c0_9 = arith.constant 0 : index
    %c0_10 = arith.constant 0 : index
    %19 = vector.load %arg4[%c0_9, %c0_10] : memref<512x128xf32, #tpu.memory_space<vmem>>, vector<512x128xf32>
    %cst_11 = arith.constant dense<0.000000e+00> : vector<24x128xf32>
    %20 = tpu.matmul %18, %19, %cst_11 {dimension_numbers = #tpu.dot_dimension_numbers<[1], [0], [0], [1], [0, 0, 1, 1], [], []>} : vector<24x512xf32>, vector<512x128xf32>, vector<24x128xf32> -> vector<24x128xf32>
    %c0_12 = arith.constant 0 : index
    %c0_13 = arith.constant 0 : index
    %21 = vector.load %arg5[%c0_12, %c0_13] : memref<1x128xf32, #tpu.memory_space<vmem>>, vector<1x128xf32>
    %22 = vector.broadcast %21 : vector<1x128xf32> to vector<24x128xf32>
    %23 = arith.addf %20, %22 : vector<24x128xf32>
    %c0_14 = arith.constant 0 : index
    %c0_15 = arith.constant 0 : index
    %24 = vector.load %arg6[%c0_14, %c0_15] : memref<24x128xf32, #tpu.memory_space<vmem>>, vector<24x128xf32>
    tpu.vector_store %arg6[%c0_14, %c0_15], %23 {strides = array<i32>} : memref<24x128xf32, #tpu.memory_space<vmem>>, vector<24x128xf32>,
    return
  }
  func.func @transform_0(%arg0: i32) -> (i32, i32) {
    %c0_i32 = arith.constant 0 : i32
    %c0_i32_0 = arith.constant 0 : i32
    return %arg0, %c0_i32 : i32, i32
  }
  func.func @transform_1(%arg0: i32) -> (i32, i32) {
    %c0_i32 = arith.constant 0 : i32
    %c0_i32_0 = arith.constant 0 : i32
    %c0_i32_1 = arith.constant 0 : i32
    return %c0_i32, %c0_i32_0 : i32, i32
  }
  func.func @transform_2(%arg0: i32) -> (i32, i32) {
    %c0_i32 = arith.constant 0 : i32
    %c0_i32_0 = arith.constant 0 : i32
    %c0_i32_1 = arith.constant 0 : i32
    return %c0_i32, %c0_i32_0 : i32, i32
  }
  func.func @transform_3(%arg0: i32) -> (i32, i32) {
    %c0_i32 = arith.constant 0 : i32
    %c0_i32_0 = arith.constant 0 : i32
    %c0_i32_1 = arith.constant 0 : i32
    return %c0_i32, %c0_i32_0 : i32, i32
  }
  func.func @transform_4(%arg0: i32) -> (i32, i32) {
    %c0_i32 = arith.constant 0 : i32
    %c0_i32_0 = arith.constant 0 : i32
    %c0_i32_1 = arith.constant 0 : i32
    return %c0_i32, %c0_i32_0 : i32, i32
  }
  func.func @transform_5(%arg0: i32) -> (i32, i32) {
    %c0_i32 = arith.constant 0 : i32
    %c0_i32_0 = arith.constant 0 : i32
    return %arg0, %c0_i32 : i32, i32
  }
}

</mosaic_0001>

<bundles_post_ra>
// kernel: tpu_custom_call.1
= control target key start
LH: loop header
LB: loop body
LE: loop exit
PB: predicated region body
PF: predicated region fallthrough
CT: control target
= control target key end

     0   :  { %s1487_s0 = inlined_call_operand.hbm [shape: f32[48,128], index: 0, kind: input, shape index: {}]   ;;  %s1488_s1 = inlined_call_operand.hbm [shape: f32[128,512], index: 1, kind: input, shape index: {}]   ;;  %s1489_s2 = inlined_call_operand.hbm [shape: f32[1,512], index: 2, kind: input, shape index: {}]   ;;  %s1490_s3 = inlined_call_operand.hbm [shape: f32[512,128], index: 3, kind: input, shape index: {}]   ;;  %s1491_s4 = inlined_call_operand.vmem [shape: f32[1,128], index: 4, kind: input, shape index: {}]   ;;  %s1492_s5 = inlined_call_operand.hbm [shape: f32[48,128], index: 5, kind: output, shape index: {}]  }
   0x1   :  { %1495 = sst [smem:[#allocation15_spill]] %s1488_s1 }
   0x2   :  { %10 = vsyncpa [#allocation3], 0 }
   0x3   :  { %12 = vsyncpa [#allocation3 + $0x1], 0 }
   0x4   :  { %13 = vsyncpa [#allocation6], 0 }
   0x5   :  { %14 = vsyncpa [#allocation9], 0 }
   0x6   :  { %15 = vsyncpa [#allocation4], 0 }
   0x7   :  { %17 = vsyncpa [#allocation4 + $0x1], 0  ;;  %s1238_s18 = smov 0   ;;  %s1240_s19 = smov 0  }
   0x8   :  { %s1242_s20 = smov 0   ;;  %s1244_s21 = smov 0  }
   0x9 LB: > { %s1259_s22 = sadd.s32 4294967295, %s1197_s21   ;;  %s877_s23 = sadd.s32 4294967294, %s1197_s21   ;;  %s1197_s21 = sphi %s1244_s21, %s1509_s21   ;;  %s1193_s20 = sphi %s1242_s20, %s1508_s20   ;;  %s1189_s19 = sphi %s1240_s19, %s1507_s19   ;;  %s1185_s18 = sphi %s1238_s18, %s1506_s18  }
   0xa   : > { %p43_p0 = scmp.ne.s32.totalorder %s1189_s19, %s1185_s18  ;;  %p44_p1 = scmp.eq.s32.totalorder %s1259_s22, 0 }
   0xb   : > { %p151_p2 = scmp.eq.s32.totalorder %s1259_s22, 1  ;;  %p157_p3 = scmp.eq.s32.totalorder %s877_s23, 1 }
   0xc   : > { %p1268_p4 = por %p44_p1, %p43_p0  ;;  %p878_p5 = scmp.ge.s32.totalorder %s1197_s21, 1 }
   0xd   : > { %p1273_p6 = por %p157_p3, %p43_p0  ;;  %p164_p7 = scmp.lt.s32.totalorder %s1197_s21, 3 }
   0xe   : > { %s1498_s1 = sld [smem:[#allocation15_spill]]  ;;  %s1199_s30 = smov [#allocation5]  }
   0xf   : > { %p1281_p8 = pnand %p878_p5, %p164_p7  ;;  %s177_s6 = sshll.u32 %s1199_s30, 4  ;;  %s178_s6 = int_to_ptr.vmem [resolvable:$true] %s177_s6 }
  0x10   : > { %s190_s10 = sshll.u32 %s1489_s2, 4  ;;  %s1200_s11 = smov 512   ;;  %s191_s10 = int_to_ptr.hbm [resolvable:$true] %s190_s10 }
  0x11   : > { %p911_p9 = pneg %p1281_p8  ;;  %s1201_s12 = smov 32  }
  0x12   : > { %s1202_s13 = smov [#allocation7]   ;;  %s201_s17 = sshll.u32 %s1490_s3, 4  ;;  %s202_s17 = int_to_ptr.hbm [resolvable:$true] %s201_s17 }
  0x13   : > { %p1289_p10 = pnand %p911_p9, %p44_p1  ;;  %s192_s14 = sshll.u32 %s1202_s13, 4  ;;  %s193_s14 = int_to_ptr.vmem [resolvable:$true] %s192_s14 }
  0x14   : > { %s175_s28 = sshll.u32 %s1498_s1, 4  ;;  %s1203_s23 = smov [#allocation8]   ;;  %s176_s28 = int_to_ptr.hbm [resolvable:$true] %s175_s28 }
  0x15   : > { %914 = dma.hbm_to_vmem [thread:$0]  (!%p1289_p10), %s176_s28, 8192, %s178_s6, [#allocation6], %s1200_s11, %s1200_s11, %s1201_s12  }
  0x16   : > { %917 = dma.hbm_to_vmem [thread:$0]  (!%p1289_p10), %s191_s10, 64, %s193_s14, [#allocation6]  }
  0x17   : > { %s203_s26 = sshll.u32 %s1203_s23, 4  ;;  %s1493_s27 = smov 128   ;;  %s204_s26 = int_to_ptr.vmem [resolvable:$true] %s203_s26 }
  0x18   : > { %s1494_s28 = smov 8   ;;  %s1310_s30 = sadd.s32 1, %s1197_s21  }
  0x19   : > { %920 = dma.hbm_to_vmem [thread:$0]  (!%p1289_p10), %s202_s17, 8192, %s204_s26, [#allocation9], %s1493_s27, %s1493_s27, %s1494_s28  }
  0x1a   : > { %s27_s6 = ssub.s32 %s1197_s21, %s1310_s30  ;;  %s30_s8 = sadd.s32 1, %s1193_s20 }
  0x1b   : > { %p28_p12 = scmp.eq.s32.totalorder %s27_s6, 0  ;;  %p37_p13 = scmp.ne.s32.totalorder %s1193_s20, %s1189_s19 }
  0x1c   : > { %p38_p0 = scmp.eq.s32.totalorder %s1197_s21, 0  ;;  %p932_p3 = scmp.lt.s32.totalorder %s1197_s21, 2 }
  0x1d   : > { %s1320_s9 = scalar_select %p28_p12, %s1193_s20, %s30_s8  }
  0x1e   : > { %p39_p5 = por %p38_p0, %p37_p13  ;;  %p1324_p7 = por %p151_p2, %p37_p13 }
  0x1f   : > { %s220_s7 = sand.u32 1, %s1193_s20   ;;  %s891_s11 = smul.u32 24, %s1197_s21 }
  0x20   : > { %s893_s12 = smul.u32 24, %s220_s7  ;;  %p1333_p9 = pnand %p932_p3, %p39_p5 }
  0x21   : > { %s229_s15 = scalar_lea.hbm %s1487_s0, %s891_s11  ;;  %s221_s6 = scalar_lea.sflag [#allocation3], %s220_s7 }
  0x22   : > { %s230_s17 = sshll.u32 %s229_s15, 4  ;;  %s224_s23 = scalar_lea.vmem [#allocation2], %s893_s12  ;;  %s231_s17 = int_to_ptr.hbm [resolvable:$true] %s230_s17 }
  0x23   : > { %s232_s26 = sshll.u32 %s224_s23, 4  ;;  %s1093_s8 = sshra.s32 %s231_s17, 4  ;;  %s233_s26 = int_to_ptr.vmem [resolvable:$true] %s232_s26  ;;  %s1094_s8 = int_to_ptr.hbm [resolvable:$true] %s1093_s8 }
  0x24   : > { %s1095_s27 = scalar_lea.hbm %s1094_s8, 24  ;;  %p1097_p10 = pneg %p1333_p9 }
  0x25   : > { %p1096_p2 = scmp.ne.s32.totalorder %s1094_s8, %s1095_s27  ;;  %s1100_s14 = scalar_lea.hbm %s1487_s0, 48 }
  0x26   : > { %p1101_p0 = scmp.lt.s32.totalorder %s1094_s8, %s1487_s0  ;;  %p1102_p3 = scmp.lt.s32.totalorder %s1100_s14, %s1095_s27 }
  0x27   : > { %p1098_p12 = pnand %p1097_p10, %p1096_p2 }
  0x28   : > { %p1103_p5 = por %p1102_p3, %p1101_p0 }
  0x29   : > { %p1099_p13 = pneg %p1098_p12 }
  0x2b   : > { %p1104_p11 = pnand %p1103_p5, %p1099_p13 }
  0x2d   : > { %1107 = shalt.err (!%p1104_p11)
}
  0x2e   : > { %s1503_s7 = smov 8   ;;  %s1504_s12 = smov 128  }
  0x2f   : > { %924 = dma.hbm_to_vmem [thread:$0]  (!%p1333_p9), %s231_s17, 384, %s233_s26, %s221_s6, %s1504_s12, %s1504_s12, %s1503_s7  }
  0x30   : > { %244 = sbr.rel (%p1281_p8) target bundleno = 404 (0x194), region = 40  ;;  %s1353_s15 = sand.u32 (!%p1281_p8), 1, %s1189_s19  }
  0x31   : > { %s894_s1 = smul.u32 (!%p1281_p8), 24, %s1353_s15  ;;  %s247_s27 = scalar_lea.sflag (!%p1281_p8), [#allocation3], %s1353_s15 }
  0x33   : > { %s1359_s28 = scalar_lea.vmem (!%p1281_p8), [#allocation2], %s894_s1 }
  0x35   : > { %1168 = dma.done.wait (%p1268_p4), %s247_s27, 384  }
  0x36   : > { %1170 = vsyncadd (%p1268_p4), %s247_s27, 4294966912 }
  0x37   : > { %1172 = dma.done.wait (%p44_p1), [#allocation6], 8256  }
  0x38   : > { %1174 = vsyncadd (%p44_p1), [#allocation6], 4294959040 }
  0x39   : > { %1176 = dma.done.wait (%p44_p1), [#allocation9], 8192  }
  0x3a   : > { %1178 = vsyncadd (%p44_p1), [#allocation9], 4294959104  ;;  %v358_v0 = vld [vmem:[#allocation5 + $0x1e0] sm:$0xff]  ;;  %v359_v1 = vld [vmem:[#allocation5 + $0x1e8] sm:$0xff]  ;;  %s292_s16 = scalar_lea.vmem [#allocation10], %s894_s1  ;;  %s892_s17 = smul.u32 24, %s1259_s22 }
  0x3b   : > { %v360_v2 = vld [vmem:[#allocation5 + $0x1f0] sm:$0xff]  ;;  %372 = vmatpush.msra.mxu0 %v358_v0  ;;  %398 = vmatpush.msra.mxu1 %v359_v1  ;;  %v361_v3 = vld [vmem:[#allocation5 + $0x1f8] sm:$0xff]  ;;  %v354_v4 = vld [vmem:[#allocation5 + $0x1c0] sm:$0xff]  ;;  %s772_s8 = sshll.u32 %s292_s16, 4  ;;  %s760_s22 = scalar_lea.sflag [#allocation4], %s1353_s15  ;;  %s773_s8 = int_to_ptr.vmem [resolvable:$true] %s772_s8 }
  0x3c   : > { %v355_v5 = vld [vmem:[#allocation5 + $0x1c8] sm:$0xff]  ;;  %424 = vmatpush.msra.mxu2 %v360_v2  ;;  %450 = vmatpush.msra.mxu3 %v361_v3  ;;  %v356_v6 = vld [vmem:[#allocation5 + $0x1d0] sm:$0xff]  ;;  %v357_v7 = vld [vmem:[#allocation5 + $0x1d8] sm:$0xff]  ;;  %s771_s6 = scalar_lea.hbm %s1492_s5, %s892_s17  ;;  %s1143_s1 = scalar_lea.hbm %s1492_s5, 48 }
  0x3d   : > { %v350_v8 = vld [vmem:[#allocation5 + $0x1a0] sm:$0xff]  ;;  %373 = vmatpush.msra.mxu0 %v354_v4  ;;  %399 = vmatpush.msra.mxu1 %v355_v5  ;;  %v351_v9 = vld [vmem:[#allocation5 + $0x1a8] sm:$0xff]  ;;  %v352_v10 = vld [vmem:[#allocation5 + $0x1b0] sm:$0xff]  ;;  %s774_s11 = sshll.u32 %s771_s6, 4  ;;  %s775_s11 = int_to_ptr.hbm [resolvable:$true] %s774_s11 }
  0x3e   : > { %v353_v11 = vld [vmem:[#allocation5 + $0x1b8] sm:$0xff]  ;;  %425 = vmatpush.msra.mxu2 %v356_v6  ;;  %451 = vmatpush.msra.mxu3 %v357_v7  ;;  %v346_v12 = vld [vmem:[#allocation5 + $0x180] sm:$0xff]  ;;  %v347_v13 = vld [vmem:[#allocation5 + $0x188] sm:$0xff]  ;;  %s1137_s13 = sshra.s32 %s775_s11, 4  ;;  %s1138_s13 = int_to_ptr.hbm [resolvable:$true] %s1137_s13 }
  0x3f   : > { %374 = vmatpush.msra.mxu0 %v350_v8  ;;  %400 = vmatpush.msra.mxu1 %v351_v9  ;;  %v348_v14 = vld [vmem:[#allocation5 + $0x190] sm:$0xff]  ;;  %v349_v15 = vld [vmem:[#allocation5 + $0x198] sm:$0xff]  ;;  %v342_v16 = vld [vmem:[#allocation5 + $0x160] sm:$0xff]  ;;  %s1139_s14 = scalar_lea.hbm %s1138_s13, 24  ;;  %p1144_p11 = scmp.lt.s32.totalorder %s1138_s13, %s1492_s5 }
  0x40   : > { %426 = vmatpush.msra.mxu2 %v352_v10  ;;  %452 = vmatpush.msra.mxu3 %v353_v11  ;;  %v343_v17 = vld [vmem:[#allocation5 + $0x168] sm:$0xff]  ;;  %v344_v18 = vld [vmem:[#allocation5 + $0x170] sm:$0xff]  ;;  %v345_v19 = vld [vmem:[#allocation5 + $0x178] sm:$0xff]  ;;  %p1140_p1 = scmp.ne.s32.totalorder %s1138_s13, %s1139_s14  ;;  %p1145_p9 = scmp.lt.s32.totalorder %s1143_s1, %s1139_s14 }
  0x41   : > { %375 = vmatpush.msra.mxu0 %v346_v12  ;;  %401 = vmatpush.msra.mxu1 %v347_v13  ;;  %v338_v20 = vld [vmem:[#allocation5 + $0x140] sm:$0xff]  ;;  %v339_v21 = vld [vmem:[#allocation5 + $0x148] sm:$0xff]  ;;  %v340_v22 = vld [vmem:[#allocation5 + $0x150] sm:$0xff] }
  0x42   : > { %427 = vmatpush.msra.mxu2 %v348_v14  ;;  %453 = vmatpush.msra.mxu3 %v349_v15  ;;  %v341_v23 = vld [vmem:[#allocation5 + $0x158] sm:$0xff]  ;;  %v334_v24 = vld [vmem:[#allocation5 + $0x120] sm:$0xff]  ;;  %v335_v25 = vld [vmem:[#allocation5 + $0x128] sm:$0xff]  ;;  %p1141_p4 = pnand %p1140_p1, %p1324_p7  ;;  %p1146_p2 = por %p1145_p9, %p1144_p11 }
  0x43   : > { %376 = vmatpush.msra.mxu0 %v342_v16  ;;  %402 = vmatpush.msra.mxu1 %v343_v17  ;;  %v336_v26 = vld [vmem:[#allocation5 + $0x130] sm:$0xff]  ;;  %v337_v27 = vld [vmem:[#allocation5 + $0x138] sm:$0xff]  ;;  %v330_v28 = vld [vmem:[#allocation5 + $0x100] sm:$0xff] }
  0x44   : > { %428 = vmatpush.msra.mxu2 %v344_v18  ;;  %454 = vmatpush.msra.mxu3 %v345_v19  ;;  %v331_v29 = vld [vmem:[#allocation5 + $0x108] sm:$0xff]  ;;  %v332_v30 = vld [vmem:[#allocation5 + $0x110] sm:$0xff]  ;;  %v333_v31 = vld [vmem:[#allocation5 + $0x118] sm:$0xff]  ;;  %p1142_p8 = pneg %p1141_p4 }
  0x45   : > { %377 = vmatpush.msra.mxu0 %v338_v20  ;;  %403 = vmatpush.msra.mxu1 %v339_v21  ;;  %v326_v32 = vld [vmem:[#allocation5 + $0xe0] sm:$0xff]  ;;  %v327_v33 = vld [vmem:[#allocation5 + $0xe8] sm:$0xff]  ;;  %v328_v34 = vld [vmem:[#allocation5 + $0xf0] sm:$0xff] }
  0x46   : > { %429 = vmatpush.msra.mxu2 %v340_v22  ;;  %455 = vmatpush.msra.mxu3 %v341_v23  ;;  %v329_v35 = vld [vmem:[#allocation5 + $0xf8] sm:$0xff]  ;;  %v322_v36 = vld [vmem:[#allocation5 + $0xc0] sm:$0xff]  ;;  %v323_v37 = vld [vmem:[#allocation5 + $0xc8] sm:$0xff]  ;;  %p1147_p10 = pnand %p1146_p2, %p1142_p8 }
  0x47   : > { %378 = vmatpush.msra.mxu0 %v334_v24  ;;  %404 = vmatpush.msra.mxu1 %v335_v25  ;;  %v324_v38 = vld [vmem:[#allocation5 + $0xd0] sm:$0xff]  ;;  %v325_v39 = vld [vmem:[#allocation5 + $0xd8] sm:$0xff]  ;;  %v318_v40 = vld [vmem:[#allocation5 + $0xa0] sm:$0xff] }
  0x48   : > { %430 = vmatpush.msra.mxu2 %v336_v26  ;;  %456 = vmatpush.msra.mxu3 %v337_v27  ;;  %v319_v41 = vld [vmem:[#allocation5 + $0xa8] sm:$0xff]  ;;  %v320_v42 = vld [vmem:[#allocation5 + $0xb0] sm:$0xff]  ;;  %v321_v43 = vld [vmem:[#allocation5 + $0xb8] sm:$0xff] }
  0x49   : > { %379 = vmatpush.msra.mxu0 %v330_v28  ;;  %405 = vmatpush.msra.mxu1 %v331_v29  ;;  %v314_v44 = vld [vmem:[#allocation5 + $0x80] sm:$0xff]  ;;  %v315_v45 = vld [vmem:[#allocation5 + $0x88] sm:$0xff]  ;;  %v316_v46 = vld [vmem:[#allocation5 + $0x90] sm:$0xff] }
  0x4a   : > { %431 = vmatpush.msra.mxu2 %v332_v30  ;;  %457 = vmatpush.msra.mxu3 %v333_v31  ;;  %v317_v47 = vld [vmem:[#allocation5 + $0x98] sm:$0xff]  ;;  %v310_v48 = vld [vmem:[#allocation5 + $0x60] sm:$0xff]  ;;  %v311_v49 = vld [vmem:[#allocation5 + $0x68] sm:$0xff] }
  0x4b   : > { %380 = vmatpush.msra.mxu0 %v326_v32  ;;  %406 = vmatpush.msra.mxu1 %v327_v33  ;;  %v312_v50 = vld [vmem:[#allocation5 + $0x70] sm:$0xff]  ;;  %v313_v51 = vld [vmem:[#allocation5 + $0x78] sm:$0xff]  ;;  %v306_v52 = vld [vmem:[#allocation5 + $0x40] sm:$0xff] }
  0x4c   : > { %432 = vmatpush.msra.mxu2 %v328_v34  ;;  %458 = vmatpush.msra.mxu3 %v329_v35  ;;  %v307_v53 = vld [vmem:[#allocation5 + $0x48] sm:$0xff]  ;;  %v308_v54 = vld [vmem:[#allocation5 + $0x50] sm:$0xff]  ;;  %v309_v55 = vld [vmem:[#allocation5 + $0x58] sm:$0xff] }
  0x4d   : > { %381 = vmatpush.msra.mxu0 %v322_v36  ;;  %407 = vmatpush.msra.mxu1 %v323_v37  ;;  %v302_v56 = vld [vmem:[#allocation5 + $0x20] sm:$0xff]  ;;  %v303_v57 = vld [vmem:[#allocation5 + $0x28] sm:$0xff]  ;;  %v304_v58 = vld [vmem:[#allocation5 + $0x30] sm:$0xff] }
  0x4e   : > { %433 = vmatpush.msra.mxu2 %v324_v38  ;;  %459 = vmatpush.msra.mxu3 %v325_v39  ;;  %v305_v59 = vld [vmem:[#allocation5 + $0x38] sm:$0xff]  ;;  %v298_v60 = vld [vmem:[#allocation5] sm:$0xff]  ;;  %v299_v61 = vld [vmem:[#allocation5 + $0x8] sm:$0xff] }
  0x4f   : > { %382 = vmatpush.msra.mxu0 %v318_v40  ;;  %408 = vmatpush.msra.mxu1 %v319_v41  ;;  %v300_v62 = vld [vmem:[#allocation5 + $0x10] sm:$0xff]  ;;  %v301_v63 = vld [vmem:[#allocation5 + $0x18] sm:$0xff]  ;;  %v596_v10 = vld [vmem:[#allocation8 + $0x60] sm:$0xff] }
  0x50   : > { %434 = vmatpush.msra.mxu2 %v320_v42  ;;  %460 = vmatpush.msra.mxu3 %v321_v43  ;;  %v295_v0 = vld [vmem:[%s1359_s28] sm:$0xff]  ;;  %v599_v1 = vld [vmem:[#allocation8 + $0x78] sm:$0xff] }
  0x51   : > { %383 = vmatpush.msra.mxu0 %v314_v44  ;;  %409 = vmatpush.msra.mxu1 %v315_v45  ;;  %v615_v2 = vld [vmem:[#allocation8 + $0xf8] sm:$0xff]  ;;  %v598_v5 = vld [vmem:[#allocation8 + $0x70] sm:$0xff]  ;;  %v597_v7 = vld [vmem:[#allocation8 + $0x68] sm:$0xff] }
  0x52   : > { %435 = vmatpush.msra.mxu2 %v316_v46  ;;  %461 = vmatpush.msra.mxu3 %v317_v47  ;;  %v631_v3 = vld [vmem:[#allocation8 + $0x178] sm:$0xff]  ;;  %v614_v6 = vld [vmem:[#allocation8 + $0xf0] sm:$0xff]  ;;  %v613_v8 = vld [vmem:[#allocation8 + $0xe8] sm:$0xff] }
  0x53   : > { %384 = vmatpush.msra.mxu0 %v310_v48  ;;  %410 = vmatpush.msra.mxu1 %v311_v49  ;;  %v647_v4 = vld [vmem:[#allocation8 + $0x1f8] sm:$0xff]  ;;  %v612_v11 = vld [vmem:[#allocation8 + $0xe0] sm:$0xff]  ;;  %v630_v15 = vld [vmem:[#allocation8 + $0x170] sm:$0xff] }
  0x54   : > { %436 = vmatpush.msra.mxu2 %v312_v50  ;;  %462 = vmatpush.msra.mxu3 %v313_v51  ;;  %v296_v9 = vld [vmem:[%s1359_s28 + $0x8] sm:$0xff]  ;;  %v297_v12 = vld [vmem:[%s1359_s28 + $0x10] sm:$0xff] }
  0x55   : > { %385 = vmatpush.msra.mxu0 %v306_v52  ;;  %411 = vmatpush.msra.mxu1 %v307_v53  ;;  %v595_v13 = vld [vmem:[#allocation8 + $0x58] sm:$0xff]  ;;  %v646_v16 = vld [vmem:[#allocation8 + $0x1f0] sm:$0xff]  ;;  %v629_v19 = vld [vmem:[#allocation8 + $0x168] sm:$0xff] }
  0x56   : > { %437 = vmatpush.msra.mxu2 %v308_v54  ;;  %463 = vmatpush.msra.mxu3 %v309_v55  ;;  %v611_v14 = vld [vmem:[#allocation8 + $0xd8] sm:$0xff]  ;;  %v594_v17 = vld [vmem:[#allocation8 + $0x50] sm:$0xff]  ;;  %v645_v20 = vld [vmem:[#allocation8 + $0x1e8] sm:$0xff] }
  0x57   : > { %386 = vmatpush.msra.mxu0 %v302_v56  ;;  %412 = vmatpush.msra.mxu1 %v303_v57  ;;  %v610_v18 = vld [vmem:[#allocation8 + $0xd0] sm:$0xff]  ;;  %v593_v21 = vld [vmem:[#allocation8 + $0x48] sm:$0xff]  ;;  %v628_v23 = vld [vmem:[#allocation8 + $0x160] sm:$0xff] }
  0x58   : > { %438 = vmatpush.msra.mxu2 %v304_v58  ;;  %464 = vmatpush.msra.mxu3 %v305_v59  ;;  %v609_v22 = vld [vmem:[#allocation8 + $0xc8] sm:$0xff]  ;;  %v644_v24 = vld [vmem:[#allocation8 + $0x1e0] sm:$0xff]  ;;  %v627_v27 = vld [vmem:[#allocation8 + $0x158] sm:$0xff] }
  0x59   : > { %387 = vmatpush.msra.mxu0 %v298_v60  ;;  %413 = vmatpush.msra.mxu1 %v299_v61  ;;  %v592_v25 = vld [vmem:[#allocation8 + $0x40] sm:$0xff]  ;;  %v643_v28 = vld [vmem:[#allocation8 + $0x1d8] sm:$0xff]  ;;  %v626_v31 = vld [vmem:[#allocation8 + $0x150] sm:$0xff] }
  0x5a   : > { %439 = vmatpush.msra.mxu2 %v300_v62  ;;  %465 = vmatpush.msra.mxu3 %v301_v63  ;;  %v608_v26 = vld [vmem:[#allocation8 + $0xc0] sm:$0xff]  ;;  %v591_v29 = vld [vmem:[#allocation8 + $0x38] sm:$0xff]  ;;  %v642_v32 = vld [vmem:[#allocation8 + $0x1d0] sm:$0xff] }
  0x5b   : > { %388 = vmatmul.f32.vlgmr.msra.gmra.mxu0 %v295_v0  ;;  %414 = vmatmul.f32.vlgmr.msra.gmra.mxu1 %v295_v0  ;;  %v607_v30 = vld [vmem:[#allocation8 + $0xb8] sm:$0xff]  ;;  %v590_v33 = vld [vmem:[#allocation8 + $0x30] sm:$0xff]  ;;  %v625_v35 = vld [vmem:[#allocation8 + $0x148] sm:$0xff] }
  0x5c   : > { %440 = vmatmul.f32.vlgmr.msra.gmra.mxu2 %v295_v0  ;;  %466 = vmatmul.f32.vlgmr.msra.gmra.mxu3 %v295_v0  ;;  %v606_v34 = vld [vmem:[#allocation8 + $0xb0] sm:$0xff]  ;;  %v641_v36 = vld [vmem:[#allocation8 + $0x1c8] sm:$0xff]  ;;  %v624_v39 = vld [vmem:[#allocation8 + $0x140] sm:$0xff] }
  0x5d   : > { %652 = vmatpush.msrb.mxu0 %v599_v1  ;;  %678 = vmatpush.msrb.mxu1 %v615_v2  ;;  %v589_v37 = vld [vmem:[#allocation8 + $0x28] sm:$0xff]  ;;  %v640_v40 = vld [vmem:[#allocation8 + $0x1c0] sm:$0xff]  ;;  %v623_v43 = vld [vmem:[#allocation8 + $0x138] sm:$0xff] }
  0x5e   : > { %704 = vmatpush.msrb.mxu2 %v631_v3  ;;  %730 = vmatpush.msrb.mxu3 %v647_v4  ;;  %v605_v38 = vld [vmem:[#allocation8 + $0xa8] sm:$0xff]  ;;  %v588_v41 = vld [vmem:[#allocation8 + $0x20] sm:$0xff]  ;;  %v639_v44 = vld [vmem:[#allocation8 + $0x1b8] sm:$0xff] }
  0x5f   : > { %653 = vmatpush.msrb.mxu0 %v598_v5  ;;  %679 = vmatpush.msrb.mxu1 %v614_v6  ;;  %v604_v42 = vld [vmem:[#allocation8 + $0xa0] sm:$0xff]  ;;  %v587_v45 = vld [vmem:[#allocation8 + $0x18] sm:$0xff]  ;;  %v622_v47 = vld [vmem:[#allocation8 + $0x130] sm:$0xff] }
  0x60   : > { %705 = vmatpush.msrb.mxu2 %v630_v15  ;;  %731 = vmatpush.msrb.mxu3 %v646_v16  ;;  %v603_v46 = vld [vmem:[#allocation8 + $0x98] sm:$0xff]  ;;  %v638_v48 = vld [vmem:[#allocation8 + $0x1b0] sm:$0xff]  ;;  %v621_v51 = vld [vmem:[#allocation8 + $0x128] sm:$0xff] }
  0x61   : > { %654 = vmatpush.msrb.mxu0 %v597_v7  ;;  %680 = vmatpush.msrb.mxu1 %v613_v8  ;;  %v586_v49 = vld [vmem:[#allocation8 + $0x10] sm:$0xff]  ;;  %v637_v52 = vld [vmem:[#allocation8 + $0x1a8] sm:$0xff]  ;;  %v620_v55 = vld [vmem:[#allocation8 + $0x120] sm:$0xff] }
  0x62   : > { %706 = vmatpush.msrb.mxu2 %v629_v19  ;;  %732 = vmatpush.msrb.mxu3 %v645_v20  ;;  %v602_v50 = vld [vmem:[#allocation8 + $0x90] sm:$0xff]  ;;  %v585_v53 = vld [vmem:[#allocation8 + $0x8] sm:$0xff]  ;;  %v636_v56 = vld [vmem:[#allocation8 + $0x1a0] sm:$0xff] }
  0x63   : > { %391 = vmatmul.f32.gmra.mxu0 %v296_v9  ;;  %417 = vmatmul.f32.gmra.mxu1 %v296_v9  ;;  %v601_v54 = vld [vmem:[#allocation8 + $0x88] sm:$0xff]  ;;  %v584_v57 = vld [vmem:[#allocation8] sm:$0xff]  ;;  %v619_v59 = vld [vmem:[#allocation8 + $0x118] sm:$0xff] }
  0x64   : > { %443 = vmatmul.f32.gmra.mxu2 %v296_v9  ;;  %469 = vmatmul.f32.gmra.mxu3 %v296_v9  ;;  %v600_v58 = vld [vmem:[#allocation8 + $0x80] sm:$0xff]  ;;  %v635_v60 = vld [vmem:[#allocation8 + $0x198] sm:$0xff]  ;;  %v618_v61 = vld [vmem:[#allocation8 + $0x110] sm:$0xff] }
  0x65   : > { %655 = vmatpush.msrb.mxu0 %v596_v10  ;;  %681 = vmatpush.msrb.mxu1 %v612_v11  ;;  %v634_v62 = vld [vmem:[#allocation8 + $0x190] sm:$0xff]  ;;  %v362_v63 = vld [vmem:[#allocation7] sm:$0xf]  ;;  %v617_v0 = vld [vmem:[#allocation8 + $0x108] sm:$0xff] }
  0x66   : > { %707 = vmatpush.msrb.mxu2 %v628_v23  ;;  %733 = vmatpush.msrb.mxu3 %v644_v24  ;;  %v633_v1 = vld [vmem:[#allocation8 + $0x188] sm:$0xff]  ;;  %v616_v2 = vld [vmem:[#allocation8 + $0x100] sm:$0xff]  ;;  %v364_v4 = vperm.slane %v362_v63, 0  ;;  %v365_v5 = vperm.slane %v362_v63, 1 }
  0x67   : > { %656 = vmatpush.msrb.mxu0 %v595_v13  ;;  %682 = vmatpush.msrb.mxu1 %v611_v14  ;;  %v632_v3 = vld [vmem:[#allocation8 + $0x180] sm:$0xff]  ;;  %v1378_v13 = vperm.slane %v362_v63, 3 }
  0x68   : > { %708 = vmatpush.msrb.mxu2 %v627_v27  ;;  %734 = vmatpush.msrb.mxu3 %v643_v28 }
  0x69   : > { %657 = vmatpush.msrb.mxu0 %v594_v17  ;;  %683 = vmatpush.msrb.mxu1 %v610_v18 }
  0x6a   : > { %709 = vmatpush.msrb.mxu2 %v626_v31  ;;  %735 = vmatpush.msrb.mxu3 %v642_v32 }
  0x6b   : > { %394 = vmatmul.f32.gmra.mxu0 %v297_v12  ;;  %420 = vmatmul.f32.gmra.mxu1 %v297_v12 }
  0x6c   : > { %446 = vmatmul.f32.gmra.mxu2 %v297_v12  ;;  %472 = vmatmul.f32.gmra.mxu3 %v297_v12  ;;  %v1376_v12 = vperm.slane %v362_v63, 2 }
  0x6d   : > { %658 = vmatpush.msrb.mxu0 %v593_v21  ;;  %684 = vmatpush.msrb.mxu1 %v609_v22 }
  0x6e   : > { %710 = vmatpush.msrb.mxu2 %v625_v35  ;;  %736 = vmatpush.msrb.mxu3 %v641_v36 }
  0x6f   : > { %659 = vmatpush.msrb.mxu0 %v592_v25  ;;  %685 = vmatpush.msrb.mxu1 %v608_v26 }
  0x70   : > { %711 = vmatpush.msrb.mxu2 %v624_v39  ;;  %737 = vmatpush.msrb.mxu3 %v640_v40 }
  0x71   : > { %660 = vmatpush.msrb.mxu0 %v591_v29  ;;  %686 = vmatpush.msrb.mxu1 %v607_v30 }
  0x72   : > { %712 = vmatpush.msrb.mxu2 %v623_v43  ;;  %738 = vmatpush.msrb.mxu3 %v639_v44 }
  0x73   : > { %661 = vmatpush.msrb.mxu0 %v590_v33  ;;  %687 = vmatpush.msrb.mxu1 %v606_v34 }
  0x74   : > { %713 = vmatpush.msrb.mxu2 %v622_v47  ;;  %739 = vmatpush.msrb.mxu3 %v638_v48 }
  0x75   : > { %662 = vmatpush.msrb.mxu0 %v589_v37  ;;  %688 = vmatpush.msrb.mxu1 %v605_v38 }
  0x76   : > { %714 = vmatpush.msrb.mxu2 %v621_v51  ;;  %740 = vmatpush.msrb.mxu3 %v637_v52 }
  0x77   : > { %663 = vmatpush.msrb.mxu0 %v588_v41  ;;  %689 = vmatpush.msrb.mxu1 %v604_v42 }
  0x78   : > { %715 = vmatpush.msrb.mxu2 %v620_v55  ;;  %741 = vmatpush.msrb.mxu3 %v636_v56 }
  0x79   : > { %664 = vmatpush.msrb.mxu0 %v587_v45  ;;  %690 = vmatpush.msrb.mxu1 %v603_v46 }
  0x7a   : > { %716 = vmatpush.msrb.mxu2 %v619_v59  ;;  %742 = vmatpush.msrb.mxu3 %v635_v60 }
  0x7b   : > { %665 = vmatpush.msrb.mxu0 %v586_v49  ;;  %691 = vmatpush.msrb.mxu1 %v602_v50 }
  0x7c   : > { %717 = vmatpush.msrb.mxu2 %v618_v61  ;;  %743 = vmatpush.msrb.mxu3 %v634_v62 }
  0x7d   : > { %666 = vmatpush.msrb.mxu0 %v585_v53  ;;  %692 = vmatpush.msrb.mxu1 %v601_v54 }
  0x7e   : > { %718 = vmatpush.msrb.mxu2 %v617_v0  ;;  %744 = vmatpush.msrb.mxu3 %v633_v1 }
  0x7f   : > { %667 = vmatpush.msrb.mxu0 %v584_v57  ;;  %693 = vmatpush.msrb.mxu1 %v600_v58 }
  0x80   : > { %719 = vmatpush.msrb.mxu2 %v616_v2  ;;  %745 = vmatpush.msrb.mxu3 %v632_v3 }
  0xd8   : > { %v389_v6 = vpop.f32.mrf.mxu0  ;;  %v415_v7 = vpop.f32.mrf.mxu1 }
  0xd9   : > { %v390_v8 = vadd.f32 %v389_v6, %v364_v4  ;;  %v416_v9 = vadd.f32 %v415_v7, %v365_v5 }
  0xdb   : > { %v488_v10 = vmul.f32 0.044715, %v390_v8  ;;  %v489_v11 = vmul.f32 0.044715, %v416_v9  ;;  %v476_v52 = vmul.f32 0.5, %v390_v8  ;;  %v477_v62 = vmul.f32 0.5, %v416_v9 }
  0xdd   : > { %v500_v14 = vmul.f32 %v488_v10, %v390_v8  ;;  %v501_v15 = vmul.f32 %v489_v11, %v416_v9 }
  0xdf   : > { %v441_v16 = vpop.f32.mrf.mxu2  ;;  %v467_v17 = vpop.f32.mrf.mxu3  ;;  %v512_v18 = vmul.f32 %v500_v14, %v390_v8  ;;  %v513_v19 = vmul.f32 %v501_v15, %v416_v9 }
  0xe0   : > { %v442_v20 = vadd.f32 %v441_v16, %v1376_v12  ;;  %v1382_v21 = vadd.f32 %v467_v17, %v1378_v13  ;;  %v392_v22 = vpop.f32.mrf.mxu0  ;;  %v418_v23 = vpop.f32.mrf.mxu1 }
  0xe1   : > { %v1384_v24 = vadd.f32 %v392_v22, %v364_v4  ;;  %v1386_v25 = vadd.f32 %v418_v23, %v365_v5  ;;  %v524_v26 = vadd.f32 %v512_v18, %v390_v8  ;;  %v525_v27 = vadd.f32 %v513_v19, %v416_v9 }
  0xe2   : > { %v490_v28 = vmul.f32 0.044715, %v442_v20  ;;  %v491_v29 = vmul.f32 0.044715, %v1382_v21  ;;  %v478_v11 = vmul.f32 0.5, %v442_v20  ;;  %v479_v17 = vmul.f32 0.5, %v1382_v21 }
  0xe3   : > { %v536_v30 = vmul.f32 0.7978846, %v524_v26  ;;  %v537_v31 = vmul.f32 0.7978846, %v525_v27  ;;  %v492_v34 = vmul.f32 0.044715, %v1384_v24 }
  0xe4   : > { %v502_v32 = vmul.f32 %v490_v28, %v442_v20  ;;  %v503_v33 = vmul.f32 %v491_v29, %v1382_v21  ;;  %v493_v35 = vmul.f32 0.044715, %v1386_v25  ;;  %v481_v23 = vmul.f32 0.5, %v1386_v25 }
  0xe5   : > { %979 = vtanh.f32 %v536_v30  ;;  %v504_v38 = vmul.f32 %v492_v34, %v1384_v24 }
  0xe6   : > { %981 = vtanh.f32 %v537_v31  ;;  %v514_v36 = vmul.f32 %v502_v32, %v442_v20  ;;  %v515_v37 = vmul.f32 %v503_v33, %v1382_v21  ;;  %v505_v41 = vmul.f32 %v493_v35, %v1386_v25 }
  0xe7   : > { %v444_v39 = vpop.f32.mrf.mxu2  ;;  %v470_v40 = vpop.f32.mrf.mxu3  ;;  %v516_v49 = vmul.f32 %v504_v38, %v1384_v24 }
  0xe8   : > { %v1396_v42 = vadd.f32 %v444_v39, %v1376_v12  ;;  %v1399_v43 = vadd.f32 %v470_v40, %v1378_v13  ;;  %v395_v44 = vpop.f32.mrf.mxu0  ;;  %v421_v45 = vpop.f32.mrf.mxu1  ;;  %v526_v46 = vadd.f32 %v514_v36, %v442_v20  ;;  %v527_v47 = vadd.f32 %v515_v37, %v1382_v21 }
  0xe9   : > { %v1402_v48 = vadd.f32 %v395_v44, %v364_v4  ;;  %v517_v50 = vmul.f32 %v505_v41, %v1386_v25  ;;  %v1406_v51 = vadd.f32 %v421_v45, %v365_v5  ;;  %v528_v56 = vadd.f32 %v516_v49, %v1384_v24 }
  0xea   : > { %v538_v53 = vmul.f32 0.7978846, %v526_v46  ;;  %v539_v54 = vmul.f32 0.7978846, %v527_v47  ;;  %v494_v58 = vmul.f32 0.044715, %v1396_v42 }
  0xeb   : > { %v980_v55 = vpop.eup %979  ;;  %v529_v57 = vadd.f32 %v517_v50, %v1386_v25  ;;  %v495_v59 = vmul.f32 0.044715, %v1399_v43  ;;  %v496_v63 = vmul.f32 0.044715, %v1402_v48  ;;  %v540_v1 = vmul.f32 0.7978846, %v528_v56 }
  0xec   : > { %v982_v60 = vpop.eup %981  ;;  %v560_v61 = vadd.f32 1.0, %v980_v55  ;;  %983 = vtanh.f32 %v538_v53  ;;  %v506_v4 = vmul.f32 %v494_v58, %v1396_v42  ;;  %v497_v9 = vmul.f32 0.044715, %v1406_v51 }
  0xed   : > { %v561_v0 = vadd.f32 1.0, %v982_v60  ;;  %985 = vtanh.f32 %v539_v54  ;;  %v541_v2 = vmul.f32 0.7978846, %v529_v57  ;;  %v507_v5 = vmul.f32 %v495_v59, %v1399_v43 }
  0xee   : > { %v572_v3 = vmul.f32 %v560_v61, %v476_v52  ;;  %v508_v6 = vmul.f32 %v496_v63, %v1402_v48  ;;  %987 = vtanh.f32 %v540_v1  ;;  %v518_v16 = vmul.f32 %v506_v4, %v1396_v42 }
  0xef   : > { %v447_v7 = vpop.f32.mrf.mxu2  ;;  %v473_v8 = vpop.f32.mrf.mxu3  ;;  %v573_v10 = vmul.f32 %v561_v0, %v477_v62  ;;  %989 = vtanh.f32 %v541_v2  ;;  %v519_v18 = vmul.f32 %v507_v5, %v1399_v43  ;;  %v509_v20 = vmul.f32 %v497_v9, %v1406_v51 }
  0xf0   : > { %v1418_v14 = vadd.f32 %v447_v7, %v1376_v12  ;;  %v1421_v15 = vadd.f32 %v473_v8, %v1378_v13  ;;  %668 = vmatmul.f32.vlgmr.msrb.gmra.mxu0 %v572_v3  ;;  %v520_v19 = vmul.f32 %v508_v6, %v1402_v48  ;;  %v480_v12 = vmul.f32 0.5, %v1384_v24 }
  0xf1   : > { %694 = vmatmul.f32.vlgmr.msrb.gmra.mxu1 %v573_v10  ;;  %v530_v13 = vadd.f32 %v518_v16, %v1396_v42  ;;  %v531_v29 = vadd.f32 %v519_v18, %v1399_v43  ;;  %v521_v30 = vmul.f32 %v509_v20, %v1406_v51  ;;  %v482_v57 = vmul.f32 0.5, %v1396_v42 }
  0xf2   : > { %v984_v22 = vpop.eup %983  ;;  %v498_v26 = vmul.f32 0.044715, %v1418_v14  ;;  %v532_v21 = vadd.f32 %v520_v19, %v1402_v48  ;;  %v499_v24 = vmul.f32 0.044715, %v1421_v15  ;;  %v483_v61 = vmul.f32 0.5, %v1399_v43 }
  0xf3   : > { %v986_v27 = vpop.eup %985  ;;  %v562_v28 = vadd.f32 1.0, %v984_v22  ;;  %v542_v32 = vmul.f32 0.7978846, %v530_v13  ;;  %v543_v35 = vmul.f32 0.7978846, %v531_v29  ;;  %v533_v37 = vadd.f32 %v521_v30, %v1406_v51 }
  0xf4   : > { %v563_v31 = vadd.f32 1.0, %v986_v27  ;;  %v510_v33 = vmul.f32 %v498_v26, %v1418_v14  ;;  %v988_v34 = vpop.eup %987  ;;  %v544_v36 = vmul.f32 0.7978846, %v532_v21  ;;  %v511_v46 = vmul.f32 %v499_v24, %v1421_v15 }
  0xf5   : > { %v574_v25 = vmul.f32 %v562_v28, %v478_v11  ;;  %v990_v38 = vpop.eup %989  ;;  %v564_v40 = vadd.f32 1.0, %v988_v34  ;;  %991 = vtanh.f32 %v542_v32  ;;  %v545_v45 = vmul.f32 0.7978846, %v533_v37 }
  0xf6   : > { %v575_v39 = vmul.f32 %v563_v31, %v479_v17  ;;  %v522_v41 = vmul.f32 %v510_v33, %v1418_v14  ;;  %v565_v44 = vadd.f32 1.0, %v990_v38  ;;  %993 = vtanh.f32 %v543_v35  ;;  %v978_v17 = vld [vmem:[%s1491_s4] ss:$0 sm:$0xff] }
  0xf7   : > { %720 = vmatmul.f32.vlgmr.msrb.gmra.mxu2 %v574_v25  ;;  %v576_v47 = vmul.f32 %v564_v40, %v480_v12  ;;  %995 = vtanh.f32 %v544_v36  ;;  %v523_v52 = vmul.f32 %v511_v46, %v1421_v15  ;;  %v484_v1 = vmul.f32 0.5, %v1402_v48 }
  0xf8   : > { %746 = vmatmul.f32.vlgmr.msrb.gmra.mxu3 %v575_v39  ;;  %v534_v49 = vadd.f32 %v522_v41, %v1418_v14  ;;  %v577_v50 = vmul.f32 %v565_v44, %v481_v23  ;;  %997 = vtanh.f32 %v545_v45  ;;  %v485_v4 = vmul.f32 0.5, %v1406_v51 }
  0xf9   : > { %671 = vmatmul.f32.gmra.mxu0 %v576_v47  ;;  %v535_v54 = vadd.f32 %v523_v52, %v1421_v15  ;;  %v486_v8 = vmul.f32 0.5, %v1418_v14  ;;  %v487_v48 = vmul.f32 0.5, %v1421_v15 }
  0xfa   : > { %v546_v53 = vmul.f32 0.7978846, %v534_v49  ;;  %697 = vmatmul.f32.gmra.mxu1 %v577_v50 }
  0xfb   : > { %v992_v55 = vpop.eup %991  ;;  %v547_v59 = vmul.f32 0.7978846, %v535_v54 }
  0xfc   : > { %999 = vtanh.f32 %v546_v53  ;;  %v994_v56 = vpop.eup %993  ;;  %v566_v58 = vadd.f32 1.0, %v992_v55 }
  0xfd   : > { %v996_v60 = vpop.eup %995  ;;  %v567_v62 = vadd.f32 1.0, %v994_v56  ;;  %1001 = vtanh.f32 %v547_v59 }
  0xfe   : > { %v998_v63 = vpop.eup %997  ;;  %v578_v0 = vmul.f32 %v566_v58, %v482_v57  ;;  %v568_v2 = vadd.f32 1.0, %v996_v60 }
  0xff   : > { %v579_v3 = vmul.f32 %v567_v62, %v483_v61  ;;  %v569_v5 = vadd.f32 1.0, %v998_v63 }
 0x100   : > { %723 = vmatmul.f32.gmra.mxu2 %v578_v0  ;;  %v580_v6 = vmul.f32 %v568_v2, %v484_v1 }
 0x101   : > { %749 = vmatmul.f32.gmra.mxu3 %v579_v3  ;;  %v581_v42 = vmul.f32 %v569_v5, %v485_v4 }
 0x102   : > { %v1000_v7 = vpop.eup %999  ;;  %674 = vmatmul.f32.gmra.mxu0 %v580_v6 }
 0x103   : > { %v570_v43 = vadd.f32 1.0, %v1000_v7  ;;  %700 = vmatmul.f32.gmra.mxu1 %v581_v42  ;;  %v1002_v10 = vpop.eup %1001 }
 0x104   : > { %v571_v9 = vadd.f32 1.0, %v1002_v10 }
 0x105   : > { %v582_v11 = vmul.f32 %v570_v43, %v486_v8 }
 0x106   : > { %v583_v16 = vmul.f32 %v571_v9, %v487_v48 }
 0x108   : > { %726 = vmatmul.f32.gmra.mxu2 %v582_v11 }
 0x109   : > { %752 = vmatmul.f32.gmra.mxu3 %v583_v16 }
 0x16d   : > { %v669_v51 = vpop.f32.mrf.mxu0 }
 0x16e   : > { %v670_v18 = vadd.f32 %v978_v17, %v669_v51  ;;  %v695_v19 = vpop.f32.mrf.mxu1 }
 0x170   : > { %v696_v14 = vadd.f32 %v695_v19, %v670_v18 }
 0x176   : > { %v672_v20 = vpop.f32.mrf.mxu0 }
 0x177   : > { %v673_v15 = vadd.f32 %v978_v17, %v672_v20  ;;  %v698_v26 = vpop.f32.mrf.mxu1 }
 0x179   : > { %v699_v27 = vadd.f32 %v698_v26, %v673_v15 }
 0x17a   : > { %v721_v22 = vpop.f32.mrf.mxu2 }
 0x17b   : > { %v722_v12 = vadd.f32 %v721_v22, %v696_v14  ;;  %v747_v23 = vpop.f32.mrf.mxu3 }
 0x17d   : > { %v748_v13 = vadd.f32 %v747_v23, %v722_v12 }
 0x17f   : > { %756 = vst [vmem:[%s292_s16] sm:$0xff] %v748_v13  ;;  %v675_v28 = vpop.f32.mrf.mxu0 }
 0x180   : > { %v676_v31 = vadd.f32 %v978_v17, %v675_v28  ;;  %v701_v33 = vpop.f32.mrf.mxu1 }
 0x182   : > { %v702_v24 = vadd.f32 %v701_v33, %v676_v31 }
 0x183   : > { %v724_v29 = vpop.f32.mrf.mxu2 }
 0x184   : > { %v725_v21 = vadd.f32 %v724_v29, %v699_v27  ;;  %v750_v30 = vpop.f32.mrf.mxu3 }
 0x186   : > { %v751_v32 = vadd.f32 %v750_v30, %v725_v21 }
 0x188   : > { %757 = vst [vmem:[%s292_s16 + $0x8] sm:$0xff] %v751_v32 }
 0x18b   : > { %v727_v34 = vpop.f32.mrf.mxu2 }
 0x18c   : > { %v728_v25 = vadd.f32 %v727_v34, %v702_v24  ;;  %v753_v35 = vpop.f32.mrf.mxu3 }
 0x18e   : > { %v754_v36 = vadd.f32 %v753_v35, %v728_v25 }
 0x190   : > { %758 = vst [vmem:[%s292_s16 + $0x10] sm:$0xff] %v754_v36 }
 0x191   : > { %1150 = shalt.err (!%p1147_p10)
}
 0x192   : > { %s1206_s15 = smov 128   ;;  %s1207_s24 = smov 8  }
 0x193   : > { %909 = dma.vmem_to_hbm [thread:$0]  (%p1324_p7), %s773_s8, 384, %s775_s11, %s760_s22, %s1206_s15, %s1206_s15, %s1207_s24  }
 0x194 PF: > { %s789_s29 = sand.u32 1, %s1185_s18   ;;  %p1505_p12 = scmp.ge.s32.totalorder %s1197_s21, 2 }
 0x195   : > { %s790_s16 = scalar_lea.sflag [#allocation4], %s789_s29 }
 0x196   : > { %p926_p13 = pnand %p1505_p12, %p1273_p6 }
 0x198   : > { %p927_p0 = pneg %p926_p13 }
 0x19a   : > { %1180 = dma.done.wait (%p927_p0), %s790_s16, 384  }
 0x19b   : > { %1182 = vsyncadd (%p927_p0), %s790_s16, 4294966912  ;;  %p20_p3 = scmp.ge.s32.totalorder %s1310_s30, 4   ;;  %s1506_s18 = smov %s1189_s19 }
 0x19c   : > { %s1507_s19 = smov %s1193_s20  ;;  %s1508_s20 = smov %s1320_s9 }
 0x19d   : > { %s1509_s21 = smov %s1310_s30  ;;  %22 = sbr.rel (!%p20_p3) target bundleno = 9 (0x9), region = 97 }
 0x1a2   :  { %796 = vsyncpa [#allocation3], 1 }
 0x1a3   :  { %798 = vsyncpa [#allocation3 + $0x1], 1 }
 0x1a4   :  { %799 = vsyncpa [#allocation6], 1 }
 0x1a5   :  { %800 = vsyncpa [#allocation9], 1 }
 0x1a6   :  { %801 = vsyncpa [#allocation4], 1 }
 0x1a7   :  { %803 = vsyncpa [#allocation4 + $0x1], 1 }

</bundles_post_ra>
